<compile_context>
chip_gen: v6e
topology: v6e:2x2x1
jax: 0.10.0
libtpu: 0.0.40
codegen_flags: <defaults>
</compile_context>

<pallas_src>
import functools

import jax
import jax.numpy as jnp
from jax import lax
from jax.experimental import pallas as pl
from jax.experimental.pallas import tpu as pltpu

# torch.finfo(torch.float32).tiny (eps used by the torch entropy computation)
_EPS = float(jnp.finfo(jnp.float32).tiny)


def _round_up(a: int, m: int) -> int:
    return ((a + m - 1) // m) * m


def _mcc_confusion_kernel(x_ref, c_part_ref, acc_ref, *,
                          temperature, n_rows, block_rows,
                          tiles_per_split, needs_mask, mxu_dtype):
    s = pl.program_id(0)   # core-split axis ("parallel")
    b = pl.program_id(1)   # batch-tile axis within split ("arbitrary")

    @pl.when(b == 0)
    def _init():
        acc_ref[...] = jnp.zeros_like(acc_ref)

    x = x_ref[...].astype(jnp.float32)            # (TM, K)
    tm, _ = x.shape

    if needs_mask:
        # Logical (unclamped) rows covered by this tile; rows >= n_rows are
        # either padding of a partial last tile or a redundant clamped
        # re-read of the last split -> mask them out.
        tile = s * tiles_per_split + b
        row = tile * block_rows + lax.broadcasted_iota(jnp.int32, (tm, 1), 0)
        valid = row < n_rows                      # (TM, 1)
        x = jnp.where(valid, x, 0.0)              # keep padded rows finite

    # --- softmax(x / T, dim=1) ---
    z = x * (1.0 / temperature)
    z = z - jnp.max(z, axis=1, keepdims=True)
    e = jnp.exp(z)
    se = jnp.sum(e, axis=1, keepdims=True)        # (TM, 1)
    y = e * pl.reciprocal(se, approx=True)        # (TM, K)

    # --- entropy via log-softmax identity; un-normalized entropy weights ---
    # (the N / sum(w) normalization cancels in the final loss)
    ent = jnp.log(se) - jnp.sum(y * z, axis=1, keepdims=True)   # (TM, 1)
    w = 1.0 + jnp.exp(-ent)
    if needs_mask:
        w = jnp.where(valid, w, 0.0)              # padded rows contribute 0

    # --- C += (y * sqrt(w))^T (y * sqrt(w)) : single operand, bf16 MXU feed --
    yw = (y * jnp.sqrt(w)).astype(mxu_dtype)
    acc_ref[...] += lax.dot_general(
        yw, yw,
        dimension_numbers=(((0,), (0,)), ((), ())),   # contract over batch
        preferred_element_type=jnp.float32)

    @pl.when(b == tiles_per_split - 1)
    def _flush():
        c_part_ref[0] = acc_ref[...]


def _mcc_finalize_kernel(c_part_ref, out_ref, *, num_classes):
    k = num_classes
    c = jnp.sum(c_part_ref[...], axis=0)                        # (K, K)
    rowsum = jnp.sum(c, axis=1, keepdims=True)                  # (K, 1)
    ri = lax.broadcasted_iota(jnp.int32, (k, k), 0)
    ci = lax.broadcasted_iota(jnp.int32, (k, k), 1)
    diag = jnp.sum(jnp.where(ri == ci, c, 0.0), axis=1, keepdims=True)  # (K,1)
    # C is symmetric -> colsum == rowsum -> sum(C / rowsum) == K, so
    # loss = (sum(Cn) - trace(Cn)) / K = (K - sum_j C_jj / rowsum_j) / K.
    ratio = diag / rowsum                          # exact div: only K values
    out_ref[0, 0] = (jnp.float32(k) - jnp.sum(ratio)) / jnp.float32(k)


def mcc_loss(x, T: float = 1.0, *, block_rows=None, num_core_splits: int = 2,
             mxu_dtype=jnp.bfloat16, vmem_limit_bytes: int = 64 * 1024 * 1024):
    """MCC loss of target logits x: [N, K]. Returns a scalar float32."""
    n, k = x.shape

    # Sublane granularity for the input dtype (8 for f32, 16 for bf16).
    sub = max(8, 32 // jnp.dtype(x.dtype).itemsize)
    if block_rows is None:
        # Biggest reasonable batch tile; 512 rows amortizes per-step overhead
        # while keeping 2x(double-buffer) input + (K,K) acc well under the
        # v7x 64 MiB VMEM budget for realistic K.
        block_rows = min(512, _round_up(n, sub))
    block_rows = max(sub, _round_up(int(block_rows), sub))

    total_tiles = pl.cdiv(n, block_rows)
    num_core_splits = max(1, min(int(num_core_splits), total_tiles))
    tiles_per_split = pl.cdiv(total_tiles, num_core_splits)

    # Padding / redundant-tile masking is only needed when the batch does not
    # divide evenly into tiles, or tiles do not divide evenly across splits.
    needs_mask = (n % block_rows != 0) or \
                 (tiles_per_split * num_core_splits != total_tiles)

    def x_index_map(s, b):
        # Clamp so redundant tiles of the last split re-read a valid block;
        # their rows are masked out inside the kernel.
        t = s * tiles_per_split + b
        return (jnp.minimum(t, total_tiles - 1), 0)

    confusion = pl.pallas_call(
        functools.partial(
            _mcc_confusion_kernel,
            temperature=float(T), n_rows=n, block_rows=block_rows,
            tiles_per_split=tiles_per_split, needs_mask=needs_mask,
            mxu_dtype=mxu_dtype),
        out_shape=jax.ShapeDtypeStruct((num_core_splits, k, k), jnp.float32),
        grid=(num_core_splits, tiles_per_split),
        in_specs=[pl.BlockSpec((block_rows, k), x_index_map)],
        out_specs=pl.BlockSpec((1, k, k), lambda s, b: (s, 0, 0)),
        scratch_shapes=[pltpu.VMEM((k, k), jnp.float32)],
        compiler_params=pltpu.CompilerParams(
            dimension_semantics=("parallel", "arbitrary"),
            vmem_limit_bytes=vmem_limit_bytes),
        cost_estimate=pl.CostEstimate(
            flops=2 * n * k * k + 12 * n * k,
            transcendentals=n * k + 4 * n,
            bytes_accessed=n * k * x.dtype.itemsize
                           + num_core_splits * k * k * 4),
    )(x)

    out = pl.pallas_call(
        functools.partial(_mcc_finalize_kernel, num_classes=k),
        out_shape=jax.ShapeDtypeStruct((1, 1), jnp.float32),
        in_specs=[pl.BlockSpec((num_core_splits, k, k), lambda: (0, 0, 0))],
        out_specs=pl.BlockSpec((1, 1), lambda: (0, 0)),
    )(confusion)
    return out[0, 0]


def _mcc_loss_ref(x, T: float = 1.0):
    """Pure-JAX reference mirroring the PyTorch forward exactly."""
    x = x.astype(jnp.float32)
    n, k = x.shape
    y = jax.nn.softmax(x / T, axis=1)
    ent = -jnp.sum(y * jnp.log(y + _EPS), axis=1)
    w = 1.0 + jnp.exp(-ent)
    w = n * w / jnp.sum(w)
    c = y.T @ (w[:, None] * y)
    c = c / jnp.sum(c, axis=1)          # same broadcast rule as torch
    return (jnp.sum(c) - jnp.trace(c)) / k


if __name__ == "__main__":
    key = jax.random.PRNGKey(0)
    k1, k2 = jax.random.split(key)

    # 1) small f32 logits: batch=8, classes=32 (single tile, single split,
    #    evenly-divisible fast path -> no mask code emitted).
    x1 = jax.random.normal(k1, (8, 32), dtype=jnp.float32)
    loss1 = mcc_loss(x1, T=1.0)
    jax.block_until_ready(loss1)
    ref1 = _mcc_loss_ref(x1, T=1.0)
    assert jnp.allclose(loss1, ref1, rtol=1e-2, atol=1e-3), (loss1, ref1)

    # 2) bf16 logits, multi-tile accumulation + 2-way "parallel" core split +
    #    masked partial last tile (batch=104 is not a multiple of 32).
    x2 = (2.0 * jax.random.normal(k2, (104, 32), dtype=jnp.float32)
          ).astype(jnp.bfloat16)
    loss2 = mcc_loss(x2, T=2.5, block_rows=32, num_core_splits=2)
    jax.block_until_ready(loss2)
    ref2 = _mcc_loss_ref(x2.astype(jnp.float32), T=2.5)
    assert jnp.allclose(loss2, ref2, rtol=1e-2, atol=1e-3), (loss2, ref2)

    print("KERNEL_OK")
</pallas_src>

<mosaic_0001>
module attributes {stable_mosaic.version = 11 : i64} {
  func.func @_mcc_confusion_kernel(%arg0: i32, %arg1: i32, %arg2: memref<8x32xf32, #tpu.memory_space<vmem>>, %arg3: memref<1x32x32xf32, #tpu.memory_space<vmem>>, %arg4: memref<32x32xf32, #tpu.memory_space<vmem>>) attributes {dimension_semantics = [#tpu.dimension_semantics<parallel>, #tpu.dimension_semantics<arbitrary>], iteration_bounds = array<i64: 1, 1>, scalar_prefetch = 0 : i64, scratch_operands = 1 : i64, tpu.core_type = #tpu.core_type<tc>, window_params = [{transform_indices = @transform_0, window_bounds = array<i64: 8, 32>}, {transform_indices = @transform_1, window_bounds = array<i64: 1, 32, 32>}]} {
    %c0_i32 = arith.constant 0 : i32
    %0 = arith.cmpi eq, %arg1, %c0_i32 : i32
    %1 = arith.extui %0 : i1 to i32
    %c0_i32_0 = arith.constant 0 : i32
    %2 = arith.cmpi ne, %1, %c0_i32_0 : i32
    scf.if %2 {
      %cst_14 = arith.constant 0.000000e+00 : f32
      %37 = vector.broadcast %cst_14 : f32 to vector<32x32xf32>
      %c0_15 = arith.constant 0 : index
      %c0_16 = arith.constant 0 : index
      %38 = vector.load %arg4[%c0_15, %c0_16] : memref<32x32xf32, #tpu.memory_space<vmem>>, vector<32x32xf32>
      tpu.vector_store %arg4[%c0_15, %c0_16], %37 {strides = array<i32>} : memref<32x32xf32, #tpu.memory_space<vmem>>, vector<32x32xf32>,
    } else {
    }
    %c0 = arith.constant 0 : index
    %c0_1 = arith.constant 0 : index
    %3 = vector.load %arg2[%c0, %c0_1] : memref<8x32xf32, #tpu.memory_space<vmem>>, vector<8x32xf32>
    %cst = arith.constant 1.000000e+00 : f32
    %4 = vector.broadcast %cst : f32 to vector<8x32xf32>
    %5 = arith.mulf %3, %4 : vector<8x32xf32>
    %cst_2 = arith.constant dense<0xFF800000> : vector<8xf32>
    %6 = vector.multi_reduction <maximumf>, %5, %cst_2 [1] : vector<8x32xf32> to vector<8xf32>
    %7 = vector.shape_cast %6 : vector<8xf32> to vector<8x1xf32>
    %8 = vector.broadcast %7 : vector<8x1xf32> to vector<8x32xf32>
    %9 = arith.subf %5, %8 : vector<8x32xf32>
    %10 = math.exp %9 : vector<8x32xf32>
    %cst_3 = arith.constant dense<0.000000e+00> : vector<8xf32>
    %11 = vector.multi_reduction <add>, %10, %cst_3 [1] : vector<8x32xf32> to vector<8xf32>
    %12 = vector.shape_cast %11 : vector<8xf32> to vector<8x1xf32>
    %13 = tpu.reciprocal %12 {approx = true} : vector<8x1xf32> -> vector<8x1xf32>
    %14 = vector.broadcast %13 : vector<8x1xf32> to vector<8x32xf32>
    %15 = arith.mulf %10, %14 : vector<8x32xf32>
    %16 = math.log %12 : vector<8x1xf32>
    %17 = arith.mulf %15, %9 : vector<8x32xf32>
    %cst_4 = arith.constant dense<0.000000e+00> : vector<8xf32>
    %18 = vector.multi_reduction <add>, %17, %cst_4 [1] : vector<8x32xf32> to vector<8xf32>
    %19 = vector.shape_cast %18 : vector<8xf32> to vector<8x1xf32>
    %20 = arith.subf %16, %19 : vector<8x1xf32>
    %cst_5 = arith.constant 0.000000e+00 : f32
    %21 = vector.broadcast %cst_5 : f32 to vector<8x1xf32>
    %22 = arith.subf %21, %20 : vector<8x1xf32>
    %23 = math.exp %22 : vector<8x1xf32>
    %cst_6 = arith.constant 1.000000e+00 : f32
    %24 = vector.broadcast %cst_6 : f32 to vector<8x1xf32>
    %25 = arith.addf %24, %23 : vector<8x1xf32>
    %26 = math.sqrt %25 : vector<8x1xf32>
    %27 = vector.broadcast %26 : vector<8x1xf32> to vector<8x32xf32>
    %28 = arith.mulf %15, %27 : vector<8x32xf32>
    %29 = arith.truncf %28 : vector<8x32xf32> to vector<8x32xbf16>
    %c0_7 = arith.constant 0 : index
    %c0_8 = arith.constant 0 : index
    %30 = vector.load %arg4[%c0_7, %c0_8] : memref<32x32xf32, #tpu.memory_space<vmem>>, vector<32x32xf32>
    %cst_9 = arith.constant dense<0.000000e+00> : vector<32x32xf32>
    %31 = tpu.matmul %29, %29, %cst_9 {dimension_numbers = #tpu.dot_dimension_numbers<[0], [0], [1], [1], [0, 1, 1, 1], [], []>} : vector<8x32xbf16>, vector<8x32xbf16>, vector<32x32xf32> -> vector<32x32xf32>
    %32 = arith.addf %30, %31 : vector<32x32xf32>
    %c0_10 = arith.constant 0 : index
    %c0_11 = arith.constant 0 : index
    %33 = vector.load %arg4[%c0_10, %c0_11] : memref<32x32xf32, #tpu.memory_space<vmem>>, vector<32x32xf32>
    tpu.vector_store %arg4[%c0_10, %c0_11], %32 {strides = array<i32>} : memref<32x32xf32, #tpu.memory_space<vmem>>, vector<32x32xf32>,
    %c0_i32_12 = arith.constant 0 : i32
    %34 = arith.cmpi eq, %arg1, %c0_i32_12 : i32
    %35 = arith.extui %34 : i1 to i32
    %c0_i32_13 = arith.constant 0 : i32
    %36 = arith.cmpi ne, %35, %c0_i32_13 : i32
    scf.if %36 {
      %c0_14 = arith.constant 0 : index
      %c0_15 = arith.constant 0 : index
      %37 = vector.load %arg4[%c0_14, %c0_15] : memref<32x32xf32, #tpu.memory_space<vmem>>, vector<32x32xf32>
      %c0_16 = arith.constant 0 : index
      %c0_17 = arith.constant 0 : index
      %c0_18 = arith.constant 0 : index
      %38 = vector.load %arg3[%c0_16, %c0_17, %c0_18] : memref<1x32x32xf32, #tpu.memory_space<vmem>>, vector<1x32x32xf32>
      %39 = vector.shape_cast %38 : vector<1x32x32xf32> to vector<32x32xf32>
      %40 = vector.shape_cast %37 : vector<32x32xf32> to vector<1x32x32xf32>
      tpu.vector_store %arg3[%c0_16, %c0_17, %c0_18], %40 {strides = array<i32>} : memref<1x32x32xf32, #tpu.memory_space<vmem>>, vector<1x32x32xf32>,
    } else {
    }
    return
  }
  func.func @transform_0(%arg0: i32, %arg1: i32) -> (i32, i32) {
    %c1_i32 = arith.constant 1 : i32
    %0 = arith.muli %arg0, %c1_i32 : i32
    %1 = arith.addi %0, %arg1 : i32
    %c0_i32 = arith.constant 0 : i32
    %2 = arith.minsi %1, %c0_i32 : i32
    %c0_i32_0 = arith.constant 0 : i32
    %c0_i32_1 = arith.constant 0 : i32
    return %2, %c0_i32_0 : i32, i32
  }
  func.func @transform_1(%arg0: i32, %arg1: i32) -> (i32, i32, i32) {
    %c0_i32 = arith.constant 0 : i32
    %c0_i32_0 = arith.constant 0 : i32
    %c0_i32_1 = arith.constant 0 : i32
    return %arg0, %c0_i32, %c0_i32_0 : i32, i32, i32
  }
}

</mosaic_0001>

<bundles_post_ra>
// kernel: tpu_custom_call.1
= control target key start
LH: loop header
LB: loop body
LE: loop exit
PB: predicated region body
PF: predicated region fallthrough
CT: control target
= control target key end

     0   :  { %6 = vsyncpa [#allocation4], 0  ;;  %s298_s0 = inlined_call_operand.hbm [shape: f32[8,32], index: 0, kind: input, shape index: {}]   ;;  %s299_s1 = inlined_call_operand.hbm [shape: f32[1,32,32], index: 1, kind: output, shape index: {}]  }
   0x1   :  { %7 = vsyncpa [#allocation5], 0  ;;  %s262_s6 = smov [#allocation3]  }
   0x2   :  { %s19_s7 = sshll.u32 %s262_s6, 4  ;;  %s20_s7 = int_to_ptr.vmem [resolvable:$true] %s19_s7 }
   0x3   :  { %s226_s8 = scalar_lea.vmem %s20_s7, 128  ;;  %p231_p1 = scmp.lt.s32.totalorder %s20_s7, %s20_s7 }
   0x4   :  { %p227_p0 = scmp.ne.s32.totalorder %s20_s7, %s226_s8  ;;  %p232_p2 = scmp.lt.s32.totalorder %s226_s8, %s226_s8 }
   0x6   :  { %p233_p3 = por %p232_p2, %p231_p1 }
   0x8   :  { %p234_p4 = pnand %p233_p3, %p227_p0 }
   0xa   :  { %237 = shalt.err (!%p234_p4)
}
   0xb   :  { %22 = dma.hbm_to_vmem [thread:$0]  %s298_s0, 128, %s20_s7, [#allocation4]  }
   0xc   :  { %258 = dma.done.wait [#allocation4], 128  }
   0xd   :  { %259 = vsyncadd [#allocation4], 4294967168  ;;  %vm34_vm0 = vcmask 261120   ;;  %v39_v0 = vld [vmem:[#allocation3] sm:$0xff]  ;;  %v263_v20 = vmov 0.0   ;;  %vm99_vm3 = vcmask 1043456  }
   0xe   :  { %v41_v1 = vsel %vm34_vm0, %v39_v0, -inf  ;;  %37 = vst.msk [vmem:[#allocation2 + $0x10] sm:$0xff] %vm34_vm0, %v263_v20  ;;  %35 = vst.msk [vmem:[#allocation2] sm:$0xff] %vm34_vm0, %v263_v20  ;;  %vm92_vm4 = vcmask 64512   ;;  %s264_s0 = smov [#allocation6]  }
   0xf   :  { %42 = vmax.xlane.f32.xlu0 %v41_v1  ;;  %36 = vst.msk [vmem:[#allocation2 + $0x8] sm:$0xff] %vm34_vm0, %v263_v20  ;;  %38 = vst.msk [vmem:[#allocation2 + $0x18] sm:$0xff] %vm34_vm0, %v263_v20  ;;  %s176_s11 = sshll.u32 %s264_s0, 4  ;;  %s177_s11 = int_to_ptr.vmem [resolvable:$true] %s176_s11 }
  0x10   :  { %s238_s12 = scalar_lea.vmem %s177_s11, 512  ;;  %p243_p6 = scmp.lt.s32.totalorder %s177_s11, %s177_s11 }
  0x11   :  { %p239_p5 = scmp.ne.s32.totalorder %s177_s11, %s238_s12  ;;  %p244_p7 = scmp.lt.s32.totalorder %s238_s12, %s238_s12 }
  0x13   :  { %p245_p8 = por %p244_p7, %p243_p6 }
  0x15   :  { %v74_v31 = vld [vmem:[#allocation2 + $0x10] sm:$0xff]  ;;  %v72_v33 = vld [vmem:[#allocation2] sm:$0xff]  ;;  %p246_p9 = pnand %p245_p8, %p239_p5 }
  0x16   :  { %v75_v36 = vld [vmem:[#allocation2 + $0x18] sm:$0xff]  ;;  %v73_v39 = vld [vmem:[#allocation2 + $0x8] sm:$0xff] }
  0x98   :  { %v43_v2 = vpop.xlane.xlu0 %42 }
  0x99   :  { %v44_v3 = vsub.f32 %v39_v0, %v43_v2 }
  0x9b   :  { %v45_v4 = vmul.f32 1.442695, %v44_v3 }
  0x9d   :  { %208 = vpow2.f32 %v45_v4 }
  0xaa   :  { %v209_v5 = vpop.eup %208 }
  0xab   :  { %v47_v6 = vsel %vm34_vm0, %v209_v5, 0.0 }
  0xac   :  { %48 = vadd.xlane.f32.xlu0 %v47_v6 }
 0x135   :  { %v49_v7 = vpop.xlane.xlu0 %48 }
 0x136   :  { %210 = vrcp.f32 %v49_v7 }
 0x137   :  { %212 = vlog2.f32 %v49_v7 }
 0x143   :  { %v211_v8 = vpop.eup %210 }
 0x144   :  { %v51_v9 = vmul.f32 %v211_v8, %v209_v5  ;;  %v213_v12 = vpop.eup %212 }
 0x145   :  { %v53_v13 = vmul.f32 0.6931472, %v213_v12 }
 0x146   :  { %v54_v10 = vmul.f32 %v51_v9, %v44_v3 }
 0x148   :  { %v55_v11 = vsel %vm34_vm0, %v54_v10, 0.0 }
 0x149   :  { %56 = vadd.xlane.f32.xlu1 %v55_v11 }
 0x1d2   :  { %v57_v14 = vpop.xlane.xlu1 %56 }
 0x1d3   :  { %v58_v15 = vsub.f32 %v53_v13, %v57_v14 }
 0x1d5   :  { %v59_v16 = vsub.f32 0.0, %v58_v15 }
 0x1d7   :  { %v60_v17 = vmul.f32 1.442695, %v59_v16 }
 0x1d9   :  { %214 = vpow2.f32 %v60_v17 }
 0x1e6   :  { %v215_v18 = vpop.eup %214 }
 0x1e7   :  { %v62_v19 = vadd.f32 1.0, %v215_v18 }
 0x1e9   :  { %216 = vrsqrt.f32 %v62_v19  ;;  %vm65_vm1 = vcmp.eq.f32.partialorder %v62_v19, inf  ;;  %v68_v23 = vand.u32 2147483648, %v62_v19  ;;  %vm67_vm2 = vcmp.eq.f32.partialorder %v62_v19, 0.0 }
 0x1f6   :  { %v217_v21 = vpop.eup %216 }
 0x1f7   :  { %v64_v22 = vmul.f32 %v217_v21, %v62_v19 }
 0x1f9   :  { %v66_v24 = vsel %vm65_vm1, %v62_v19, %v64_v22 }
 0x1fa   :  { %v69_v25 = vsel %vm67_vm2, %v68_v23, %v66_v24 }
 0x1fb   :  { %v70_v26 = vmul.f32 %v69_v25, %v51_v9 }
 0x1fd   :  { %v71_v27 = vpack.c.bf16 %v70_v26, %v70_v26 }
 0x1ff   :  { %76 = vxpose.xlu1.c.b16.start.end [1/1] (short) (narrow) %v71_v27, 32  ;;  %201 = vmatprep.subr.msk.bf16.mxu0 %vm99_vm3, %v71_v27  ;;  %v101_v28 = vsel %vm99_vm3, %v71_v27, 0 }
 0x200   :  { %196 = vmatpush3.bf16.msra.mxu0 %v101_v28 }
 0x261   :  { %v84_v29 = vpop.trf.xlu1 }
 0x262   :  { %197 = vmatprep.mubr.msk.bf16.mxu0 %vm92_vm4, %v84_v29 }
 0x265   :  { %v85_v30 = vpop.trf.xlu1 }
 0x266   :  { %198 = vmatmul.mubr.msk.bf16.vlgmr.msra.gmra.mxu0 %vm92_vm4, %v85_v30 }
 0x326   :  { %v199_v32 = vpop.f32.mrf.mxu0 }
 0x327   :  { %v154_v34 = vadd.f32 %v199_v32, %v74_v31 }
 0x328   :  { %v137_v35 = vpop.f32.mrf.mxu0 }
 0x329   :  { %158 = vst.msk [vmem:[#allocation2 + $0x10] sm:$0xff] %vm34_vm0, %v154_v34  ;;  %v152_v37 = vadd.f32 %v137_v35, %v72_v33 }
 0x32a   :  { %v200_v38 = vpop.f32.mrf.mxu0 }
 0x32b   :  { %156 = vst.msk [vmem:[#allocation2] sm:$0xff] %vm34_vm0, %v152_v37  ;;  %v155_v40 = vadd.f32 %v200_v38, %v75_v36 }
 0x32c   :  { %v140_v41 = vpop.f32.mrf.mxu0 }
 0x32d   :  { %159 = vst.msk [vmem:[#allocation2 + $0x18] sm:$0xff] %vm34_vm0, %v155_v40  ;;  %v153_v42 = vadd.f32 %v140_v41, %v73_v39 }
 0x32f   :  { %157 = vst.msk [vmem:[#allocation2 + $0x8] sm:$0xff] %vm34_vm0, %v153_v42 }
 0x330   :  { %v165_v43 = vld [vmem:[#allocation2 + $0x10] sm:$0xff] }
 0x331   :  { %169 = vst.msk [vmem:[#allocation6 + $0x10] sm:$0xff] %vm34_vm0, %v165_v43 }
 0x332   :  { %v163_v44 = vld [vmem:[#allocation2] sm:$0xff] }
 0x333   :  { %167 = vst.msk [vmem:[#allocation6] sm:$0xff] %vm34_vm0, %v163_v44 }
 0x334   :  { %v166_v45 = vld [vmem:[#allocation2 + $0x18] sm:$0xff] }
 0x335   :  { %170 = vst.msk [vmem:[#allocation6 + $0x18] sm:$0xff] %vm34_vm0, %v166_v45 }
 0x336   :  { %v164_v46 = vld [vmem:[#allocation2 + $0x8] sm:$0xff] }
 0x337   :  { %168 = vst.msk [vmem:[#allocation6 + $0x8] sm:$0xff] %vm34_vm0, %v164_v46 }
 0x338   :  { %249 = shalt.err (!%p246_p9)
}
 0x339   :  { %s265_s13 = smov 128   ;;  %s266_s14 = smov 8  }
 0x33a   :  { %182 = dma.vmem_to_hbm [thread:$0]  %s177_s11, 512, %s299_s1, [#allocation5], %s265_s13, %s265_s13, %s266_s14  }
 0x33b   :  { %260 = dma.done.wait [#allocation5], 512  }
 0x33c   :  { %261 = vsyncadd [#allocation5], 4294966784 }
 0x33d   :  { %186 = vsyncpa [#allocation4], 1 }
 0x33e   :  { %187 = vsyncpa [#allocation5], 1 }

</bundles_post_ra>
